<compile_context>
chip_gen: v5e
topology: v5e:2x2
jax: 0.10.0
libtpu: 0.0.40
codegen_flags: <defaults>
</compile_context>

<pallas_src>
import jax
import jax.numpy as jnp
from jax.experimental import pallas as pl
from jax.experimental.pallas import tpu as pltpu


_LANE = 128


def _identity_kernel(x_ref, o_ref):
    # Pure pass-through: copy the current VMEM tile to the output tile.
    o_ref[...] = x_ref[...]


def _sublane_pack(dtype) -> int:
    """Native sublane packing for the dtype (rows-per-vreg)."""
    itemsize = jnp.dtype(dtype).itemsize
    return {4: 8, 2: 16, 1: 32}.get(itemsize, 8)


def _chip_params():
    """(target_block_bytes, vmem_limit_bytes) tuned per TPU generation."""
    try:
        kind = jax.devices()[0].device_kind.lower()
    except Exception:  # pragma: no cover - defensive
        kind = ""
    if "v7" in kind or "tpu7" in kind:
        # 3.2 TB/s HBM: per-step overhead is relatively expensive -> big tiles.
        # 4 buffers (in+out, double-buffered) x 8 MiB = 32 MiB < 40 MiB < 64 MiB.
        return 8 * 1024 * 1024, 40 * 1024 * 1024
    if "v6" in kind:
        # 4 buffers x 4 MiB = 16 MiB, well under the 32 MiB scoped default.
        return 4 * 1024 * 1024, 32 * 1024 * 1024
    # v5e / unknown: 2 MiB tiles already sit at the ~85% roofline plateau;
    # stay within the 16 MiB scoped-VMEM default.
    return 2 * 1024 * 1024, 16 * 1024 * 1024


def _choose_2d_view(n, pack):
    """Pick a lane+sublane-dense (rows, cols) factorization of n, or None.

    cols must be a multiple of 128 and rows a multiple of `pack` (unless the
    whole tensor fits in a single full-extent block along that axis).
    """
    for cols in (2048, 1536, 1024, 768, 512, 384, 256, 128):
        if n % cols:
            continue
        rows = n // cols
        if rows % pack == 0 or rows < pack:
            return rows, cols
    return None


def _tile_plan(rows, cols, itemsize, pack, target_block_bytes):
    """Choose (block_rows, block_cols) targeting ~target_block_bytes."""
    if cols <= _LANE:
        block_cols = cols  # full extent: legal regardless of the (8,128) rule
    else:
        max_cols = max(
            _LANE,
            (target_block_bytes // (pack * itemsize)) // _LANE * _LANE,
        )
        block_cols = min((cols // _LANE) * _LANE, max_cols)

    if rows <= pack:
        block_rows = rows  # full extent
    else:
        row_budget = max(pack, target_block_bytes // (block_cols * itemsize))
        block_rows = min(rows, row_budget)
        block_rows = max(pack, (block_rows // pack) * pack)
        # Prefer >=2 row blocks when the tensor is larger than one block, so
        # both 'parallel' grid axes can shard across v7x's 2 TensorCores
        # (no-op on single-core v5e/v6e).
        total_bytes = rows * cols * itemsize
        if total_bytes > target_block_bytes and block_rows >= rows:
            half = max(pack, ((rows // 2) // pack) * pack)
            block_rows = half

    return block_rows, block_cols


def _pallas_copy(x):
    """Lane-dense tiled HBM->HBM copy (debug/exercise path only)."""
    orig_shape = x.shape
    dtype = x.dtype
    n = x.size
    if n == 0:
        return x

    itemsize = jnp.dtype(dtype).itemsize
    pack = _sublane_pack(dtype)
    target_block_bytes, vmem_limit = _chip_params()

    view = _choose_2d_view(n, pack)
    if view is None:
        # Pad the flat tensor up to a multiple of pack*128 so the 2-D view is
        # always sublane+lane dense (avoids 1-row vregs -> vld/vst bottleneck).
        unit = pack * _LANE
        n_pad = ((n + unit - 1) // unit) * unit
        flat = jnp.pad(x.reshape(-1), (0, n_pad - n))
        rows, cols = n_pad // _LANE, _LANE
        for c in (2048, 1024, 512, 256):
            if n_pad % c == 0 and (n_pad // c) % pack == 0:
                rows, cols = n_pad // c, c
                break
        x2 = flat.reshape(rows, cols)
        padded = True
    else:
        rows, cols = view
        x2 = x.reshape(rows, cols)  # row-major flatten: free bitcast relayout
        padded = False

    block_rows, block_cols = _tile_plan(
        rows, cols, itemsize, pack, target_block_bytes
    )
    grid = (pl.cdiv(rows, block_rows), pl.cdiv(cols, block_cols))

    spec = pl.BlockSpec((block_rows, block_cols), lambda i, j: (i, j))

    out2 = pl.pallas_call(
        _identity_kernel,
        out_shape=jax.ShapeDtypeStruct((rows, cols), dtype),
        grid_spec=pltpu.PrefetchScalarGridSpec(
            num_scalar_prefetch=0,
            grid=grid,
            in_specs=[spec],
            out_specs=spec,
        ),
        compiler_params=pltpu.CompilerParams(
            dimension_semantics=("parallel", "parallel"),
            vmem_limit_bytes=vmem_limit,
        ),
    )(x2)

    out_flat = out2.reshape(-1)
    if padded:
        out_flat = out_flat[:n]
    return out_flat.reshape(orig_shape)


def identity_op(x, use_pallas_copy=False):
    """IdentityOp.forward(x) == x.

    Default: pure pass-through (zero HBM traffic, zero launch cost — the
    optimal identity).  Set use_pallas_copy=True to materialize the result
    through a lane-dense Pallas copy kernel (debug / TPU-path exercise only).
    """
    if not use_pallas_copy:
        return x
    return _pallas_copy(x)


class IdentityOp:
    """JAX/Pallas equivalent of the PyTorch IdentityOp module."""

    def __init__(self, in_channels, out_channels, use_pallas_copy=False):
        # The PyTorch module has no parameters; nothing to initialize.
        del in_channels, out_channels
        self._use_pallas_copy = use_pallas_copy

    def __call__(self, x):
        return identity_op(x, use_pallas_copy=self._use_pallas_copy)


if __name__ == "__main__":
    key = jax.random.PRNGKey(0)
    # NCHW, small shapes: batch=2, channels=4, spatial=16x16
    x = jax.random.normal(key, (2, 4, 16, 16), dtype=jnp.float32)

    # Default (optimal) path: pure pass-through.
    op = IdentityOp(in_channels=4, out_channels=4)
    y = jax.block_until_ready(op(x))
    assert y.shape == x.shape and y.dtype == x.dtype
    assert bool(jnp.all(y == x))

    # Exercise the Pallas copy kernel path once so the TPU kernel is run.
    op_dbg = IdentityOp(in_channels=4, out_channels=4, use_pallas_copy=True)
    y_dbg = jax.block_until_ready(op_dbg(x))
    assert y_dbg.shape == x.shape and y_dbg.dtype == x.dtype
    assert bool(jnp.all(y_dbg == x))

    print("KERNEL_OK")
</pallas_src>

<mosaic_0001>
module attributes {stable_mosaic.version = 11 : i64} {
  func.func @_identity_kernel(%arg0: i32, %arg1: i32, %arg2: memref<1x2048xf32, #tpu.memory_space<vmem>>, %arg3: memref<1x2048xf32, #tpu.memory_space<vmem>>) attributes {dimension_semantics = [#tpu.dimension_semantics<parallel>, #tpu.dimension_semantics<parallel>], iteration_bounds = array<i64: 1, 1>, scalar_prefetch = 0 : i64, scratch_operands = 0 : i64, tpu.core_type = #tpu.core_type<tc>, window_params = [{transform_indices = @transform_0, window_bounds = array<i64: 1, 2048>}, {transform_indices = @transform_1, window_bounds = array<i64: 1, 2048>}]} {
    %c0 = arith.constant 0 : index
    %c0_0 = arith.constant 0 : index
    %0 = vector.load %arg2[%c0, %c0_0] : memref<1x2048xf32, #tpu.memory_space<vmem>>, vector<1x2048xf32>
    %c0_1 = arith.constant 0 : index
    %c0_2 = arith.constant 0 : index
    %1 = vector.load %arg3[%c0_1, %c0_2] : memref<1x2048xf32, #tpu.memory_space<vmem>>, vector<1x2048xf32>
    tpu.vector_store %arg3[%c0_1, %c0_2], %0 {strides = array<i32>} : memref<1x2048xf32, #tpu.memory_space<vmem>>, vector<1x2048xf32>,
    return
  }
  func.func @transform_0(%arg0: i32, %arg1: i32) -> (i32, i32) {
    %c0_i32 = arith.constant 0 : i32
    return %arg0, %arg1 : i32, i32
  }
  func.func @transform_1(%arg0: i32, %arg1: i32) -> (i32, i32) {
    %c0_i32 = arith.constant 0 : i32
    return %arg0, %arg1 : i32, i32
  }
}

</mosaic_0001>

<bundles_post_ra>
// kernel: tpu_custom_call.1
= control target key start
LH: loop header
LB: loop body
LE: loop exit
PB: predicated region body
PF: predicated region fallthrough
CT: control target
= control target key end

     0   :  { %6 = vsyncpa [#allocation3], 0  ;;  %s116_s0 = inlined_call_operand.hbm [shape: f32[1,2048], index: 0, kind: input, shape index: {}]   ;;  %s117_s1 = inlined_call_operand.hbm [shape: f32[1,2048], index: 1, kind: output, shape index: {}]  }
   0x1   :  { %7 = vsyncpa [#allocation4], 0  ;;  %s13_s8 = sshll.u32 %s116_s0, 4  ;;  %s98_s9 = smov [#allocation2]   ;;  %s14_s8 = int_to_ptr.hbm [resolvable:$true] %s13_s8 }
   0x2   :  { %s15_s10 = sshll.u32 %s98_s9, 4  ;;  %s16_s10 = int_to_ptr.vmem [resolvable:$true] %s15_s10 }
   0x3   :  { %18 = dma.hbm_to_vmem [thread:$0]  %s14_s8, 256, %s16_s10, [#allocation3]  }
   0x4   :  { %94 = dma.done.wait [#allocation3], 256  }
   0x5   :  { %95 = vsyncadd [#allocation3], 4294967040  ;;  %s99_s11 = smov [#allocation5]   ;;  %s34_s15 = sshll.u32 %s117_s1, 4  ;;  %v23_v0 = vld [vmem:[#allocation2] sm:$0xff]  ;;  %v24_v1 = vld [vmem:[#allocation2 + $0x8] sm:$0xff]  ;;  %s35_s15 = int_to_ptr.hbm [resolvable:$true] %s34_s15 }
   0x6   :  { %s32_s12 = sshll.u32 %s99_s11, 4  ;;  %25 = vst [vmem:[#allocation5] sm:$0xff] %v23_v0  ;;  %s33_s12 = int_to_ptr.vmem [resolvable:$true] %s32_s12 }
   0x7   :  { %26 = vst [vmem:[#allocation5 + $0x8] sm:$0xff] %v24_v1 }
   0x8   :  { %37 = dma.vmem_to_hbm [thread:$0]  %s33_s12, 256, %s35_s15, [#allocation4]  }
   0x9   :  { %96 = dma.done.wait [#allocation4], 256  }
   0xa   :  { %97 = vsyncadd [#allocation4], 4294967040 }
   0xb   :  { %42 = vsyncpa [#allocation3], 1 }
   0xc   :  { %43 = vsyncpa [#allocation4], 1 }

</bundles_post_ra>
